<compile_context>
chip_gen: v7x
topology: tpu7x:2x2x1
jax: 0.10.0
libtpu: 0.0.40
codegen_flags: <defaults>
</compile_context>

<pallas_src>
import jax
import jax.numpy as jnp
from jax.experimental import pallas as pl
from jax.experimental.pallas import tpu as pltpu


def _round_down(v, m):
    return (v // m) * m


def _round_up(v, m):
    return -(-v // m) * m


def _tpu_vmem_capacity_bytes():
    """Physical VMEM per TensorCore; conservative 64 MiB fallback (v7x-sized)."""
    try:
        cap = int(pltpu.get_tpu_info().vmem_capacity_bytes)
        if cap > 0:
            return cap
    except Exception:
        pass
    return 64 << 20


def _make_kernel(bt, hw, thw, tail_valid):
    """Build a ChannelAttention kernel closed over static tiling constants."""
    inv_hw = 1.0 / float(hw)
    needs_mask = (hw % thw) != 0

    def kernel(x_ref, w1t_ref, w2t_ref, o_ref, max_acc, sum_acc):
        # x_ref:   (bt, C, thw)  one spatial slice of a block of batch elements
        # w1t_ref: (C, Cr)       first 1x1-conv weight, pre-transposed (resident)
        # w2t_ref: (Cr, C)       second 1x1-conv weight, pre-transposed (resident)
        # o_ref:   (bt, C)       attention weights (lane-dense)
        # max_acc, sum_acc: (bt, C) f32 running spatial max / sum
        s = pl.program_id(1)
        n_s = pl.num_programs(1)

        @pl.when(s == 0)
        def _init():
            max_acc[...] = jnp.full_like(max_acc, -jnp.inf)
            sum_acc[...] = jnp.zeros_like(sum_acc)

        x = x_ref[...]                                     # (bt, C, thw), native dtype

        def _accumulate(x_max, x_sum):
            # Max reduces in the native dtype (exact, no rounding); sum widens to f32
            # during the reduction so bf16 inputs never pay a full-tile cast.
            max_acc[...] = jnp.maximum(
                max_acc[...], jnp.max(x_max, axis=-1).astype(jnp.float32))
            sum_acc[...] = sum_acc[...] + jnp.sum(x_sum, axis=-1, dtype=jnp.float32)

        if needs_mask:
            # Mask only the (single) partial tail block; full blocks keep the bare
            # load + max + add path so the stream stays HBM-bound.
            @pl.when(s == n_s - 1)
            def _tail():
                lane = jax.lax.broadcasted_iota(jnp.int32, (1, 1, thw), 2)
                valid = lane < tail_valid
                x_max = jnp.where(valid, x, jnp.asarray(-jnp.inf, dtype=x.dtype))
                x_sum = jnp.where(valid, x, jnp.zeros((), dtype=x.dtype))
                _accumulate(x_max, x_sum)

            @pl.when(s != n_s - 1)
            def _full():
                _accumulate(x, x)
        else:
            _accumulate(x, x)

        @pl.when(s == n_s - 1)
        def _epilogue():
            max_p = max_acc[...]                            # (bt, C)
            avg_p = sum_acc[...] * inv_hw                   # (bt, C)
            # Fuse both SE branches into a single lane-dense matmul pair.
            # (Tiny MXU work, once per batch block; deliberately left simple.)
            pooled = jnp.concatenate([max_p, avg_p], axis=0)          # (2*bt, C)
            h = jnp.dot(pooled, w1t_ref[...].astype(jnp.float32),
                        preferred_element_type=jnp.float32)           # (2*bt, Cr)
            h = jnp.maximum(h, 0.0)
            se = jnp.dot(h, w2t_ref[...].astype(jnp.float32),
                         preferred_element_type=jnp.float32)          # (2*bt, C)
            out = jax.nn.sigmoid(se[:bt] + se[bt:])                   # (bt, C)
            # NOTE: if B % bt != 0, padded rows of the last batch block carry
            # garbage through this epilogue; they are discarded by the clipped
            # output writeback, so valid rows are unaffected.
            o_ref[...] = out.astype(o_ref.dtype)

    return kernel


def _choose_tiles(B, C, HW, itemsize, target_bytes, split_for_two_cores,
                  block_b, block_hw):
    """Pick (bt, thw) so bt is sublane-legal (mult of 8 or == B), thw is lane-legal
    (mult of 128 or == HW), and bt*C*thw*itemsize stays near target_bytes."""
    full_b_bytes = C * HW * itemsize

    # ---- batch tile ----
    if block_b is not None:
        bt = int(block_b)
        if bt >= B:
            bt = B
        elif bt % 8 != 0:
            bt = B if B <= 8 else max(8, _round_down(bt, 8))
    else:
        bt_raw = max(1, target_bytes // max(1, full_b_bytes))
        if bt_raw >= B:
            bt = B
        elif B <= 8:
            # Cannot legally split below 8 rows; take the whole (small) batch and
            # shrink the spatial tile instead.
            bt = B
        else:
            bt = max(8, _round_down(bt_raw, 8))
        # v7x-class (2 TensorCores): keep >= 2 batch blocks when legally possible so
        # the "parallel" axis can be sharded across cores.
        if split_for_two_cores and B > 8:
            half = _round_up((B + 1) // 2, 8)
            if half < B:
                bt = min(bt, half)

    # ---- spatial tile ----
    if block_hw is not None:
        thw = min(int(block_hw), HW)
        if thw != HW and thw % 128 != 0:
            thw = min(HW, max(128, _round_down(thw, 128)))
    else:
        if bt * full_b_bytes <= target_bytes:
            thw = HW
        else:
            thw = _round_down(target_bytes // max(1, bt * C * itemsize), 128)
            thw = min(HW, max(128, thw))

    # If the sublane bump (bt -> 8) still blows the budget even at the minimum
    # spatial slice, fall back to the smallest legal batch tile.
    if block_b is None and B > 8 and bt > 8 and bt * C * thw * itemsize > target_bytes:
        bt = 8

    return int(bt), int(thw)


def channel_attention(x, w1, w2, *, block_b=None, block_hw=None,
                      target_tile_bytes=None):
    """CBAM channel attention.

    x:  (B, C, H, W)
    w1: (C//r, C)  -- weight of Conv2d(C, C//r, 1, bias=False), squeezed
    w2: (C, C//r)  -- weight of Conv2d(C//r, C, 1, bias=False), squeezed
    Returns sigmoid(se(maxpool(x)) + se(avgpool(x))), shape (B, C, 1, 1).
    """
    B, C, H, W = x.shape
    Cr = w1.shape[0]
    HW = H * W
    itemsize = jnp.dtype(x.dtype).itemsize
    w_itemsize = jnp.dtype(w1.dtype).itemsize

    vmem_cap = _tpu_vmem_capacity_bytes()
    big_vmem = vmem_cap >= (96 << 20)          # v5e/v6e class (128 MiB / TC)
    small_vmem = not big_vmem                  # v7x class (64 MiB / TC, 2 TCs)

    if target_tile_bytes is None:
        # v5e/v6e: 16 MiB tiles (32 MiB double-buffered input) are cheap on 128 MiB
        # VMEM; v7x: keep ~8 MiB -- its 3.2 TB/s HBM already amortizes per-step cost.
        target_tile_bytes = (16 << 20) if big_vmem else (8 << 20)
    target_tile_bytes = int(target_tile_bytes)

    bt, thw = _choose_tiles(B, C, HW, itemsize, target_tile_bytes,
                            split_for_two_cores=small_vmem,
                            block_b=block_b, block_hw=block_hw)

    x_flat = x.reshape(B, C, HW)
    w1_t = jnp.transpose(w1)            # (C, Cr)
    w2_t = jnp.transpose(w2)            # (Cr, C)

    grid = (pl.cdiv(B, bt), pl.cdiv(HW, thw))
    tail_valid = HW - (grid[1] - 1) * thw
    kernel = _make_kernel(bt, HW, thw, tail_valid)

    # Explicit VMEM budget from the actual footprint, clamped per generation.
    in_block = bt * C * thw * itemsize
    w_bytes = 2 * C * Cr * w_itemsize
    out_block = bt * C * itemsize
    scratch = 2 * bt * C * 4
    footprint = 2 * in_block + 2 * w_bytes + 2 * out_block + scratch
    gen_cap = (64 << 20) if big_vmem else (40 << 20)
    floor = min(32 << 20, gen_cap)
    vmem_limit = min(max(footprint * 5 // 4, floor), gen_cap)
    vmem_limit = max(vmem_limit, footprint + (1 << 20))
    vmem_limit = min(vmem_limit, vmem_cap)

    cost = pl.CostEstimate(
        flops=int(2 * (2 * B) * C * Cr * 2),                 # both SE matmuls, both branches
        transcendentals=int(B * C),                          # sigmoid
        bytes_accessed=int(B * C * HW * itemsize + 2 * C * Cr * w_itemsize
                           + B * C * itemsize),
    )

    out = pl.pallas_call(
        kernel,
        out_shape=jax.ShapeDtypeStruct((B, C), x.dtype),
        grid_spec=pltpu.PrefetchScalarGridSpec(
            num_scalar_prefetch=0,
            grid=grid,
            in_specs=[
                pl.BlockSpec((bt, C, thw), lambda b, s: (b, 0, s)),
                pl.BlockSpec((C, Cr), lambda b, s: (0, 0)),   # constant index ->
                pl.BlockSpec((Cr, C), lambda b, s: (0, 0)),   # weights stay resident
            ],
            out_specs=pl.BlockSpec((bt, C), lambda b, s: (b, 0)),
            scratch_shapes=[
                pltpu.VMEM((bt, C), jnp.float32),   # running spatial max
                pltpu.VMEM((bt, C), jnp.float32),   # running spatial sum
            ],
        ),
        compiler_params=pltpu.CompilerParams(
            dimension_semantics=("parallel", "arbitrary"),
            vmem_limit_bytes=int(vmem_limit),
        ),
        cost_estimate=cost,
    )(x_flat, w1_t, w2_t)

    return out.reshape(B, C, 1, 1)


def reference_channel_attention(x, w1, w2):
    """Pure-JAX reference matching the PyTorch module semantics (computed in f32)."""
    B, C, H, W = x.shape
    xf = x.reshape(B, C, H * W).astype(jnp.float32)
    max_pool = jnp.max(xf, axis=-1)                         # (B, C)
    avg_pool = jnp.mean(xf, axis=-1)                        # (B, C)
    w1f = w1.astype(jnp.float32)
    w2f = w2.astype(jnp.float32)

    def se(p):                                              # p: (B, C)
        h = jnp.maximum(p @ w1f.T, 0.0)                     # (B, Cr)
        return h @ w2f.T                                    # (B, C)

    out = jax.nn.sigmoid(se(max_pool) + se(avg_pool))       # (B, C)
    return out.reshape(B, C, 1, 1).astype(x.dtype)


def _run_case(key, B, C, H, W, reduction, dtype=jnp.float32,
              atol=1e-5, rtol=1e-5, **kw):
    Cr = max(1, C // reduction)
    kx, k1, k2 = jax.random.split(key, 3)
    x = jax.random.normal(kx, (B, C, H, W), dtype=jnp.float32).astype(dtype)
    # Deterministic synthetic weights (Kaiming-ish scaling for 1x1 convs, no bias).
    w1 = jax.random.normal(k1, (Cr, C), dtype=jnp.float32) * (2.0 / C) ** 0.5
    w2 = jax.random.normal(k2, (C, Cr), dtype=jnp.float32) * (2.0 / Cr) ** 0.5

    out = jax.block_until_ready(channel_attention(x, w1, w2, **kw))
    ref = reference_channel_attention(x, w1, w2)
    assert out.shape == (B, C, 1, 1)
    assert jnp.allclose(out.astype(jnp.float32), ref.astype(jnp.float32),
                        atol=atol, rtol=rtol), (
        f"mismatch vs reference for shape {(B, C, H, W)} dtype={dtype} kwargs={kw}")


if __name__ == "__main__":
    key = jax.random.PRNGKey(0)
    k0, k1, k2, k3 = jax.random.split(key, 4)

    # Module config: channel=64, reduction=16 -> hidden = 4.
    # Default tiling: whole problem fits one (B, C, HW) block.
    _run_case(k0, B=2, C=64, H=16, W=16, reduction=16)

    # Same shapes, but force the spatial-split accumulation path (2 HW blocks).
    _run_case(k1, B=2, C=64, H=16, W=16, reduction=16, block_b=2, block_hw=128)

    # Non-divisible spatial extent (HW=144, block 128) exercises the gated
    # partial-tail masking path (-inf / 0 padding for max / sum).
    _run_case(k2, B=2, C=32, H=12, W=12, reduction=8, block_b=2, block_hw=128)

    # bf16 input exercises the native-dtype max / widened-sum path.
    _run_case(k3, B=2, C=64, H=16, W=16, reduction=16, dtype=jnp.bfloat16,
              atol=1e-2, rtol=1e-2, block_hw=128)

    print("KERNEL_OK")
</pallas_src>

<mosaic_0001>
module attributes {stable_mosaic.version = 11 : i64} {
  func.func @kernel(%arg0: i32, %arg1: i32, %arg2: memref<2x64x256xf32, #tpu.memory_space<vmem>>, %arg3: memref<64x4xf32, #tpu.memory_space<vmem>>, %arg4: memref<4x64xf32, #tpu.memory_space<vmem>>, %arg5: memref<2x64xf32, #tpu.memory_space<vmem>>, %arg6: memref<2x64xf32, #tpu.memory_space<vmem>>, %arg7: memref<2x64xf32, #tpu.memory_space<vmem>>) attributes {dimension_semantics = [#tpu.dimension_semantics<parallel>, #tpu.dimension_semantics<arbitrary>], iteration_bounds = array<i64: 1, 1>, scalar_prefetch = 0 : i64, scratch_operands = 2 : i64, tpu.core_type = #tpu.core_type<tc>, window_params = [{transform_indices = @transform_0, window_bounds = array<i64: 2, 64, 256>}, {pipeline_mode = #tpu.pipeline_mode<synchronous>, transform_indices = @transform_1, window_bounds = array<i64: 64, 4>}, {pipeline_mode = #tpu.pipeline_mode<synchronous>, transform_indices = @transform_2, window_bounds = array<i64: 4, 64>}, {transform_indices = @transform_3, window_bounds = array<i64: 2, 64>}]} {
    %c0_i32 = arith.constant 0 : i32
    %0 = arith.cmpi eq, %arg1, %c0_i32 : i32
    %1 = arith.extui %0 : i1 to i32
    %c0_i32_0 = arith.constant 0 : i32
    %2 = arith.cmpi ne, %1, %c0_i32_0 : i32
    scf.if %2 {
      %cst_14 = arith.constant 0xFF800000 : f32
      %15 = vector.broadcast %cst_14 : f32 to vector<2x64xf32>
      %c0_15 = arith.constant 0 : index
      %c0_16 = arith.constant 0 : index
      %16 = vector.load %arg6[%c0_15, %c0_16] : memref<2x64xf32, #tpu.memory_space<vmem>>, vector<2x64xf32>
      tpu.vector_store %arg6[%c0_15, %c0_16], %15 {strides = array<i32>} : memref<2x64xf32, #tpu.memory_space<vmem>>, vector<2x64xf32>,
      %cst_17 = arith.constant 0.000000e+00 : f32
      %17 = vector.broadcast %cst_17 : f32 to vector<2x64xf32>
      %c0_18 = arith.constant 0 : index
      %c0_19 = arith.constant 0 : index
      %18 = vector.load %arg7[%c0_18, %c0_19] : memref<2x64xf32, #tpu.memory_space<vmem>>, vector<2x64xf32>
      tpu.vector_store %arg7[%c0_18, %c0_19], %17 {strides = array<i32>} : memref<2x64xf32, #tpu.memory_space<vmem>>, vector<2x64xf32>,
    } else {
    }
    %c0 = arith.constant 0 : index
    %c0_1 = arith.constant 0 : index
    %c0_2 = arith.constant 0 : index
    %3 = vector.load %arg2[%c0, %c0_1, %c0_2] : memref<2x64x256xf32, #tpu.memory_space<vmem>>, vector<2x64x256xf32>
    %c0_3 = arith.constant 0 : index
    %c0_4 = arith.constant 0 : index
    %4 = vector.load %arg6[%c0_3, %c0_4] : memref<2x64xf32, #tpu.memory_space<vmem>>, vector<2x64xf32>
    %cst = arith.constant dense<0xFF800000> : vector<2x64xf32>
    %5 = vector.multi_reduction <maximumf>, %3, %cst [2] : vector<2x64x256xf32> to vector<2x64xf32>
    %6 = arith.maximumf %4, %5 : vector<2x64xf32>
    %c0_5 = arith.constant 0 : index
    %c0_6 = arith.constant 0 : index
    %7 = vector.load %arg6[%c0_5, %c0_6] : memref<2x64xf32, #tpu.memory_space<vmem>>, vector<2x64xf32>
    tpu.vector_store %arg6[%c0_5, %c0_6], %6 {strides = array<i32>} : memref<2x64xf32, #tpu.memory_space<vmem>>, vector<2x64xf32>,
    %c0_7 = arith.constant 0 : index
    %c0_8 = arith.constant 0 : index
    %8 = vector.load %arg7[%c0_7, %c0_8] : memref<2x64xf32, #tpu.memory_space<vmem>>, vector<2x64xf32>
    %cst_9 = arith.constant dense<0.000000e+00> : vector<2x64xf32>
    %9 = vector.multi_reduction <add>, %3, %cst_9 [2] : vector<2x64x256xf32> to vector<2x64xf32>
    %10 = arith.addf %8, %9 : vector<2x64xf32>
    %c0_10 = arith.constant 0 : index
    %c0_11 = arith.constant 0 : index
    %11 = vector.load %arg7[%c0_10, %c0_11] : memref<2x64xf32, #tpu.memory_space<vmem>>, vector<2x64xf32>
    tpu.vector_store %arg7[%c0_10, %c0_11], %10 {strides = array<i32>} : memref<2x64xf32, #tpu.memory_space<vmem>>, vector<2x64xf32>,
    %c0_i32_12 = arith.constant 0 : i32
    %12 = arith.cmpi eq, %arg1, %c0_i32_12 : i32
    %13 = arith.extui %12 : i1 to i32
    %c0_i32_13 = arith.constant 0 : i32
    %14 = arith.cmpi ne, %13, %c0_i32_13 : i32
    scf.if %14 {
      %c0_14 = arith.constant 0 : index
      %c0_15 = arith.constant 0 : index
      %15 = vector.load %arg6[%c0_14, %c0_15] : memref<2x64xf32, #tpu.memory_space<vmem>>, vector<2x64xf32>
      %c0_16 = arith.constant 0 : index
      %c0_17 = arith.constant 0 : index
      %16 = vector.load %arg7[%c0_16, %c0_17] : memref<2x64xf32, #tpu.memory_space<vmem>>, vector<2x64xf32>
      %cst_18 = arith.constant 3.906250e-03 : f32
      %17 = vector.broadcast %cst_18 : f32 to vector<2x64xf32>
      %18 = arith.mulf %16, %17 : vector<2x64xf32>
      %19 = tpu.concatenate %15, %18 in 0 : vector<2x64xf32>, vector<2x64xf32> -> vector<4x64xf32>
      %c0_19 = arith.constant 0 : index
      %c0_20 = arith.constant 0 : index
      %20 = vector.load %arg3[%c0_19, %c0_20] : memref<64x4xf32, #tpu.memory_space<vmem>>, vector<64x4xf32>
      %cst_21 = arith.constant dense<0.000000e+00> : vector<4x4xf32>
      %21 = tpu.matmul %19, %20, %cst_21 {dimension_numbers = #tpu.dot_dimension_numbers<[1], [0], [0], [1], [0, 0, 1, 1], [], []>} : vector<4x64xf32>, vector<64x4xf32>, vector<4x4xf32> -> vector<4x4xf32>
      %cst_22 = arith.constant 0.000000e+00 : f32
      %22 = vector.broadcast %cst_22 : f32 to vector<4x4xf32>
      %23 = arith.maximumf %21, %22 : vector<4x4xf32>
      %c0_23 = arith.constant 0 : index
      %c0_24 = arith.constant 0 : index
      %24 = vector.load %arg4[%c0_23, %c0_24] : memref<4x64xf32, #tpu.memory_space<vmem>>, vector<4x64xf32>
      %cst_25 = arith.constant dense<0.000000e+00> : vector<4x64xf32>
      %25 = tpu.matmul %23, %24, %cst_25 {dimension_numbers = #tpu.dot_dimension_numbers<[1], [0], [0], [1], [0, 0, 1, 1], [], []>} : vector<4x4xf32>, vector<4x64xf32>, vector<4x64xf32> -> vector<4x64xf32>
      %26 = vector.extract_strided_slice %25 {offsets = [0, 0], sizes = [2, 64], strides = [1, 1]} : vector<4x64xf32> to vector<2x64xf32>
      %27 = vector.extract_strided_slice %25 {offsets = [2, 0], sizes = [2, 64], strides = [1, 1]} : vector<4x64xf32> to vector<2x64xf32>
      %28 = arith.addf %26, %27 : vector<2x64xf32>
      %29 = arith.negf %28 : vector<2x64xf32>
      %30 = math.exp %29 : vector<2x64xf32>
      %cst_26 = arith.constant 1.000000e+00 : f32
      %31 = vector.broadcast %cst_26 : f32 to vector<2x64xf32>
      %32 = arith.addf %31, %30 : vector<2x64xf32>
      %33 = arith.divf %31, %32 : vector<2x64xf32>
      %c0_27 = arith.constant 0 : index
      %c0_28 = arith.constant 0 : index
      %34 = vector.load %arg5[%c0_27, %c0_28] : memref<2x64xf32, #tpu.memory_space<vmem>>, vector<2x64xf32>
      tpu.vector_store %arg5[%c0_27, %c0_28], %33 {strides = array<i32>} : memref<2x64xf32, #tpu.memory_space<vmem>>, vector<2x64xf32>,
    } else {
    }
    return
  }
  func.func @transform_0(%arg0: i32, %arg1: i32) -> (i32, i32, i32) {
    %c0_i32 = arith.constant 0 : i32
    %c0_i32_0 = arith.constant 0 : i32
    return %arg0, %c0_i32, %arg1 : i32, i32, i32
  }
  func.func @transform_1(%arg0: i32, %arg1: i32) -> (i32, i32) {
    %c0_i32 = arith.constant 0 : i32
    %c0_i32_0 = arith.constant 0 : i32
    %c0_i32_1 = arith.constant 0 : i32
    return %c0_i32, %c0_i32_0 : i32, i32
  }
  func.func @transform_2(%arg0: i32, %arg1: i32) -> (i32, i32) {
    %c0_i32 = arith.constant 0 : i32
    %c0_i32_0 = arith.constant 0 : i32
    %c0_i32_1 = arith.constant 0 : i32
    return %c0_i32, %c0_i32_0 : i32, i32
  }
  func.func @transform_3(%arg0: i32, %arg1: i32) -> (i32, i32) {
    %c0_i32 = arith.constant 0 : i32
    %c0_i32_0 = arith.constant 0 : i32
    return %arg0, %c0_i32 : i32, i32
  }
}

</mosaic_0001>

<bundles_post_ra>
// kernel: tpu_custom_call.1
= control target key start
LH: loop header
LB: loop body
LE: loop exit
PB: predicated region body
PF: predicated region fallthrough
CT: control target
= control target key end

     0   :  { %8 = vsyncpa [#allocation5], 0  ;;  %s870_s0 = inlined_call_operand.hbm [shape: f32[2,64,256], index: 0, kind: input, shape index: {}]   ;;  %s871_s1 = inlined_call_operand.vmem [shape: f32[64,4], index: 1, kind: input, shape index: {}]   ;;  %s872_s2 = inlined_call_operand.vmem [shape: f32[4,64], index: 2, kind: input, shape index: {}]   ;;  %s873_s3 = inlined_call_operand.hbm [shape: f32[2,64], index: 3, kind: output, shape index: {}]  }
   0x1   :  { %9 = vsyncpa [#allocation6], 0  ;;  %s690_s12 = smov [#allocation4]   ;;  %s642_s16 = scalar_lea.hbm %s870_s0, 4096 }
   0x2   :  { %s15_s13 = sshll.u32 %s690_s12, 4  ;;  %p643_p0 = scmp.ne.s32.totalorder %s870_s0, %s642_s16  ;;  %s16_s13 = int_to_ptr.vmem [resolvable:$true] %s15_s13 }
   0x3   :  { %p646_p1 = scmp.lt.u32.totalorder %s642_s16, %s870_s0 }
   0x5   :  { %p648_p2 = pnand %p646_p1, %p643_p0 }
   0x7   :  { %651 = shalt.err (!%p648_p2)
}
   0x8   :  { %s652_s21 = scalar_lea.vmem %s16_s13, 4096  ;;  %p657_p4 = scmp.lt.s32.totalorder %s16_s13, %s16_s13 }
   0x9   :  { %p653_p3 = scmp.ne.s32.totalorder %s16_s13, %s652_s21  ;;  %p658_p5 = scmp.lt.s32.totalorder %s652_s21, %s652_s21 }
   0xb   :  { %p659_p6 = por %p658_p5, %p657_p4 }
   0xd   :  { %p660_p7 = pnand %p659_p6, %p653_p3 }
   0xf   :  { %663 = shalt.err (!%p660_p7)
}
  0x10   :  { %s691_s22 = smov 256   ;;  %s692_s23 = smov 16  }
  0x11   :  { %21 = dma.hbm_to_vmem [thread:$0]  %s870_s0, 4096, %s16_s13, [#allocation5], %s691_s22, %s691_s22, %s692_s23  }
  0x12   :  { %686 = dma.done.wait [#allocation5], 4096  }
  0x13   :  { %687 = vsyncadd [#allocation5], 4294963200  ;;  %v52_v0 = vld [vmem:[#allocation4 + $0x80] sm:$0xff]  ;;  %v53_v1 = vld [vmem:[#allocation4 + $0x88] sm:$0xff]  ;;  %vm33_vm0 = vcmask 517120   ;;  %v693_v62 = vmov 0.0  }
  0x14   :  { %v36_v2 = vld [vmem:[#allocation4] sm:$0xff]  ;;  %v258_v3 = vadd.f32 %v53_v1, %v52_v0  ;;  %v37_v4 = vld [vmem:[#allocation4 + $0x8] sm:$0xff]  ;;  %v54_v5 = vld [vmem:[#allocation4 + $0x90] sm:$0xff]  ;;  %v93_v33 = vmax.f32 %v52_v0, %v53_v1  ;;  %35 = vst.msk [vmem:[#allocation3] sm:$0x3] %vm33_vm0, %v693_v62  ;;  %613 = vmatprep.subr.mxu1 %v693_v62  ;;  %v694_v1 = vmov -inf  }
  0x15   :  { %v55_v6 = vld [vmem:[#allocation4 + $0x98] sm:$0xff]  ;;  %v234_v7 = vadd.f32 %v37_v4, %v36_v2  ;;  %v38_v8 = vld [vmem:[#allocation4 + $0x10] sm:$0xff]  ;;  %v56_v12 = vld [vmem:[#allocation4 + $0xa0] sm:$0xff]  ;;  %v69_v31 = vmax.f32 %v36_v2, %v37_v4  ;;  %34 = vst.msk [vmem:[#allocation2] sm:$0x3] %vm33_vm0, %v694_v1  ;;  %vm696_vm1 = vmmov 0  }
  0x16   :  { %v39_v9 = vld [vmem:[#allocation4 + $0x18] sm:$0xff]  ;;  %259 = vadd.xlane.f32.xlu1 %v258_v3  ;;  %v261_v10 = vadd.f32 %v55_v6, %v54_v5  ;;  %v57_v13 = vld [vmem:[#allocation4 + $0xa8] sm:$0xff]  ;;  %v40_v14 = vld [vmem:[#allocation4 + $0x20] sm:$0xff]  ;;  %v96_v32 = vmax.f32 %v54_v5, %v55_v6  ;;  %v695_v5 = vmov 0.0|0.0   ;;  %610 = vmatprep.mubr.msk.f32.mxu0 %vm696_vm1, %v693_v62  ;;  %vm144_vm2 = vcmask 130112   ;;  %s697_s15 = smov [#allocation7]  }
  0x17   :  { %235 = vadd.xlane.f32.xlu0 %v234_v7  ;;  %v237_v11 = vadd.f32 %v39_v9, %v38_v8  ;;  %v41_v15 = vld [vmem:[#allocation4 + $0x28] sm:$0xff]  ;;  %v264_v16 = vadd.f32 %v57_v13, %v56_v12  ;;  %v58_v18 = vld [vmem:[#allocation4 + $0xb0] sm:$0xff]  ;;  %v59_v19 = vld [vmem:[#allocation4 + $0xb8] sm:$0xff]  ;;  %v72_v30 = vmax.f32 %v38_v8, %v39_v9  ;;  %v99_v40 = vmax.f32 %v56_v12, %v57_v13  ;;  %s570_s16 = sshll.u32 %s697_s15, 4  ;;  %s571_s16 = int_to_ptr.vmem [resolvable:$true] %s570_s16 }
  0x18   :  { %v240_v17 = vadd.f32 %v41_v15, %v40_v14  ;;  %v42_v20 = vld [vmem:[#allocation4 + $0x30] sm:$0xff]  ;;  %v43_v21 = vld [vmem:[#allocation4 + $0x38] sm:$0xff]  ;;  %v267_v22 = vadd.f32 %v59_v19, %v58_v18  ;;  %v60_v24 = vld [vmem:[#allocation4 + $0xc0] sm:$0xff]  ;;  %v75_v41 = vmax.f32 %v40_v14, %v41_v15  ;;  %v102_v48 = vmax.f32 %v58_v18, %v59_v19  ;;  %618 = vmatprep.subr.bf16.mxu0 %v695_v5  ;;  %p669_p9 = scmp.lt.s32.totalorder %s571_s16, %s571_s16 }
  0x19   :  { %v243_v23 = vadd.f32 %v43_v21, %v42_v20  ;;  %v61_v25 = vld [vmem:[#allocation4 + $0xc8] sm:$0xff]  ;;  %v44_v26 = vld [vmem:[#allocation4 + $0x40] sm:$0xff]  ;;  %v62_v34 = vld [vmem:[#allocation4 + $0xd0] sm:$0xff]  ;;  %v78_v49 = vmax.f32 %v42_v20, %v43_v21  ;;  %615 = vmatprep.mubr.msk.f32.mxu1 %vm696_vm1, %v693_v62  ;;  %vm151_vm3 = vcmask 195712   ;;  %vm158_vm4 = vcmask 261312  }
  0x1a   :  { %262 = vadd.xlane.f32.xlu1 %v261_v10  ;;  %v45_v27 = vld [vmem:[#allocation4 + $0x48] sm:$0xff]  ;;  %v270_v28 = vadd.f32 %v61_v25, %v60_v24  ;;  %v63_v35 = vld [vmem:[#allocation4 + $0xd8] sm:$0xff]  ;;  %v46_v36 = vld [vmem:[#allocation4 + $0x50] sm:$0xff]  ;;  %v105_v56 = vmax.f32 %v60_v24, %v61_v25  ;;  %vm165_vm5 = vcmask 326912   ;;  %vm172_vm6 = vcmask 392512  }
  0x1b   :  { %238 = vadd.xlane.f32.xlu0 %v237_v11  ;;  %v246_v29 = vadd.f32 %v45_v27, %v44_v26  ;;  %v47_v37 = vld [vmem:[#allocation4 + $0x58] sm:$0xff]  ;;  %v273_v38 = vadd.f32 %v63_v35, %v62_v34  ;;  %v64_v42 = vld [vmem:[#allocation4 + $0xe0] sm:$0xff]  ;;  %v65_v43 = vld [vmem:[#allocation4 + $0xe8] sm:$0xff]  ;;  %v81_v57 = vmax.f32 %v44_v26, %v45_v27  ;;  %v108_v58 = vmax.f32 %v62_v34, %v63_v35 }
  0x1c   :  { %v249_v39 = vadd.f32 %v47_v37, %v46_v36  ;;  %v48_v44 = vld [vmem:[#allocation4 + $0x60] sm:$0xff]  ;;  %v49_v45 = vld [vmem:[#allocation4 + $0x68] sm:$0xff]  ;;  %v276_v46 = vadd.f32 %v65_v43, %v64_v42  ;;  %v66_v50 = vld [vmem:[#allocation4 + $0xf0] sm:$0xff]  ;;  %v84_v59 = vmax.f32 %v46_v36, %v47_v37  ;;  %v111_v60 = vmax.f32 %v64_v42, %v65_v43 }
  0x1d   :  { %v252_v47 = vadd.f32 %v49_v45, %v48_v44  ;;  %v67_v51 = vld [vmem:[#allocation4 + $0xf8] sm:$0xff]  ;;  %v50_v52 = vld [vmem:[#allocation4 + $0x70] sm:$0xff]  ;;  %v87_v61 = vmax.f32 %v48_v44, %v49_v45  ;;  %v392_v3 = vld [vmem:[%s871_s1 + $0x8] sm:$0xff]  ;;  %v133_v27 = vlaneseq  ;;  %vm179_vm7 = vcmask 458112  }
  0x1e   :  { %265 = vadd.xlane.f32.xlu1 %v264_v16  ;;  %v51_v53 = vld [vmem:[#allocation4 + $0x78] sm:$0xff]  ;;  %v279_v54 = vadd.f32 %v67_v51, %v66_v50  ;;  %v114_v63 = vmax.f32 %v66_v50, %v67_v51  ;;  %v393_v6 = vld [vmem:[%s871_s1 + $0x10] sm:$0xff]  ;;  %v396_v10 = vld [vmem:[%s871_s1 + $0x28] sm:$0xff]  ;;  %vm186_vm8 = vcmask 523712   ;;  %vm227_vm9 = vcmask 1041409  }
  0x1f   :  { %241 = vadd.xlane.f32.xlu0 %v240_v17  ;;  %v255_v55 = vadd.f32 %v51_v53, %v50_v52  ;;  %v90_v0 = vmax.f32 %v50_v52, %v51_v53  ;;  %v391_v2 = vld [vmem:[%s871_s1] sm:$0xff]  ;;  %v394_v7 = vld [vmem:[%s871_s1 + $0x18] sm:$0xff]  ;;  %v397_v12 = vld [vmem:[%s871_s1 + $0x30] sm:$0xff]  ;;  %v136_v35 = vshrl.u32 %v133_v27, 7  ;;  %vm389_vm10 = vcmask 1041408  }
  0x20   :  { %v619_v4 = vpack.c.bf16 %v392_v3, %v391_v2  ;;  %v622_v8 = vpack.c.bf16 %v394_v7, %v393_v6  ;;  %v395_v9 = vld [vmem:[%s871_s1 + $0x20] sm:$0xff]  ;;  %v398_v13 = vld [vmem:[%s871_s1 + $0x38] sm:$0xff]  ;;  %vm399_vm11 = vcmask 523264   ;;  %vm479_vm12 = vcmask 1043456  }
  0x21   :  { %v625_v11 = vpack.c.bf16 %v396_v10, %v395_v9  ;;  %v628_v14 = vpack.c.bf16 %v398_v13, %v397_v12  ;;  %vm475_vm13 = vcmask 31744  }
  0x22   :  { %268 = vadd.xlane.f32.xlu1 %v267_v22  ;;  %620 = vmatpush3.bf16.msra.mxu0 %v619_v4 }
  0x23   :  { %244 = vadd.xlane.f32.xlu0 %v243_v23  ;;  %621 = vmatprep.subr.bf16.mxu0 %v695_v5 }
  0x26   :  { %271 = vadd.xlane.f32.xlu1 %v270_v28  ;;  %623 = vmatpush3.bf16.msra.mxu0 %v622_v8 }
  0x27   :  { %247 = vadd.xlane.f32.xlu0 %v246_v29  ;;  %624 = vmatprep.subr.bf16.mxu0 %v695_v5 }
  0x2a   :  { %73 = vmax.xlane.f32.xlu1 %v72_v30  ;;  %626 = vmatpush3.bf16.msra.mxu0 %v625_v11  ;;  %v134_v30 = vand.u32 127, %v133_v27 }
  0x2b   :  { %70 = vmax.xlane.f32.xlu0 %v69_v31  ;;  %627 = vmatprep.subr.bf16.mxu0 %v695_v5 }
  0x2c   :  { %v146_v34 = vadd.s32 4294967280, %v134_v30  ;;  %v153_v36 = vadd.s32 4294967272, %v134_v30  ;;  %v160_v37 = vadd.s32 4294967264, %v134_v30  ;;  %v174_v43 = vadd.s32 4294967248, %v134_v30 }
  0x2d   :  { %v772_v44 = vsub.s32 %v134_v30, %v136_v35  ;;  %v181_v51 = vadd.s32 4294967240, %v134_v30 }
  0x2e   :  { %97 = vmax.xlane.f32.xlu1 %v96_v32  ;;  %629 = vmatpush3.bf16.msra.mxu0 %v628_v14  ;;  %v139_v32 = vadd.s32 4294967288, %v134_v30  ;;  %v770_v42 = vsub.s32 %v146_v34, %v136_v35  ;;  %v774_v45 = vsub.s32 %v153_v36, %v136_v35 }
  0x2f   :  { %94 = vmax.xlane.f32.xlu0 %v93_v33  ;;  %v794_v2 = vsub.s32 %v181_v51, %v136_v35 }
  0x32   :  { %274 = vadd.xlane.f32.xlu1 %v273_v38 }
  0x33   :  { %250 = vadd.xlane.f32.xlu0 %v249_v39  ;;  %v766_v39 = vsub.s32 %v139_v32, %v136_v35 }
  0x36   :  { %100 = vmax.xlane.f32.xlu1 %v99_v40  ;;  %v167_v40 = vadd.s32 4294967256, %v134_v30 }
  0x37   :  { %76 = vmax.xlane.f32.xlu0 %v75_v41 }
  0x3a   :  { %277 = vadd.xlane.f32.xlu1 %v276_v46  ;;  %v776_v46 = vsub.s32 %v160_v37, %v136_v35 }
  0x3b   :  { %253 = vadd.xlane.f32.xlu0 %v252_v47 }
  0x3e   :  { %103 = vmax.xlane.f32.xlu1 %v102_v48 }
  0x3f   :  { %79 = vmax.xlane.f32.xlu0 %v78_v49  ;;  %v779_v49 = vsub.s32 %v167_v40, %v136_v35 }
  0x42   :  { %280 = vadd.xlane.f32.xlu1 %v279_v54  ;;  %v783_v54 = vsub.s32 %v174_v43, %v136_v35 }
  0x43   :  { %256 = vadd.xlane.f32.xlu0 %v255_v55 }
  0x46   :  { %106 = vmax.xlane.f32.xlu1 %v105_v56 }
  0x47   :  { %82 = vmax.xlane.f32.xlu0 %v81_v57 }
  0x4a   :  { %109 = vmax.xlane.f32.xlu1 %v108_v58 }
  0x4b   :  { %85 = vmax.xlane.f32.xlu0 %v84_v59 }
  0x4e   :  { %112 = vmax.xlane.f32.xlu1 %v111_v60 }
  0x4f   :  { %88 = vmax.xlane.f32.xlu0 %v87_v61 }
  0x52   :  { %115 = vmax.xlane.f32.xlu1 %v114_v63 }
  0x53   :  { %91 = vmax.xlane.f32.xlu0 %v90_v0 }
  0xa3   :  { %v260_v15 = vpop.xlane.xlu1 %259 }
  0xa4   :  { %v236_v16 = vpop.xlane.xlu0 %235  ;;  %v340_v55 = vrot.slane %v260_v15, %v772_v44 }
  0xa5   :  { %v301_v58 = vrot.slane %v236_v16, %v772_v44 }
  0xa7   :  { %v263_v17 = vpop.xlane.xlu1 %262 }
  0xa8   :  { %v239_v18 = vpop.xlane.xlu0 %238  ;;  %v344_v48 = vrot.slane %v263_v17, %v766_v39 }
  0xa9   :  { %v305_v52 = vrot.slane %v239_v18, %v766_v39 }
  0xaa   :  { %v345_v62 = vsel %vm144_vm2, %v344_v48, %v340_v55 }
  0xab   :  { %v266_v19 = vpop.xlane.xlu1 %265  ;;  %v306_v3 = vsel %vm144_vm2, %v305_v52, %v301_v58 }
  0xac   :  { %v242_v20 = vpop.xlane.xlu0 %241  ;;  %v349_v53 = vrot.slane %v266_v19, %v770_v42 }
  0xad   :  { %v310_v56 = vrot.slane %v242_v20, %v770_v42 }
  0xae   :  { %v350_v4 = vsel %vm151_vm3, %v349_v53, %v345_v62 }
  0xaf   :  { %v269_v21 = vpop.xlane.xlu1 %268  ;;  %v311_v7 = vsel %vm151_vm3, %v310_v56, %v306_v3 }
  0xb0   :  { %v245_v22 = vpop.xlane.xlu0 %244  ;;  %v354_v57 = vrot.slane %v269_v21, %v774_v45 }
  0xb1   :  { %v315_v59 = vrot.slane %v245_v22, %v774_v45  ;;  %v233_v22 = vld [vmem:[#allocation3] sm:$0x3] }
  0xb2   :  { %v355_v8 = vsel %vm158_vm4, %v354_v57, %v350_v4 }
  0xb3   :  { %v272_v23 = vpop.xlane.xlu1 %271  ;;  %v316_v10 = vsel %vm158_vm4, %v315_v59, %v311_v7 }
  0xb4   :  { %v248_v24 = vpop.xlane.xlu0 %247  ;;  %v359_v60 = vrot.slane %v272_v23, %v776_v46 }
  0xb5   :  { %v320_v63 = vrot.slane %v248_v24, %v776_v46 }
  0xb6   :  { %v360_v11 = vsel %vm165_vm5, %v359_v60, %v355_v8 }
  0xb7   :  { %v756_v25 = vpop.xlane.xlu1 %73  ;;  %v321_v13 = vsel %vm165_vm5, %v320_v63, %v316_v10  ;;  %v68_v63 = vld [vmem:[#allocation2] sm:$0x3] }
  0xb8   :  { %v758_v26 = vpop.xlane.xlu0 %70  ;;  %v143_v36 = vrot.slane %v756_v25, %v766_v39 }
  0xb9   :  { %v138_v37 = vrot.slane %v758_v26, %v772_v44 }
  0xbb   :  { %v760_v28 = vpop.xlane.xlu1 %97 }
  0xbc   :  { %v762_v29 = vpop.xlane.xlu0 %94 }
  0xbd   :  { %v191_v34 = vrot.slane %v762_v29, %v772_v44  ;;  %v145_v44 = vsel %vm144_vm2, %v143_v36, %v138_v37 }
  0xbf   :  { %v275_v31 = vpop.xlane.xlu1 %274 }
  0xc0   :  { %v251_v33 = vpop.xlane.xlu0 %250  ;;  %v364_v0 = vrot.slane %v275_v31, %v779_v49 }
  0xc1   :  { %v325_v5 = vrot.slane %v251_v33, %v779_v49  ;;  %v195_v33 = vrot.slane %v760_v28, %v766_v39 }
  0xc2   :  { %v365_v14 = vsel %vm172_vm6, %v364_v0, %v360_v11 }
  0xc3   :  { %v764_v38 = vpop.xlane.xlu1 %100  ;;  %v326_v17 = vsel %vm172_vm6, %v325_v5, %v321_v13 }
  0xc4   :  { %v768_v41 = vpop.xlane.xlu0 %76  ;;  %v200_v40 = vrot.slane %v764_v38, %v770_v42 }
  0xc5   :  { %v150_v43 = vrot.slane %v768_v41, %v770_v42 }
  0xc7   :  { %v278_v47 = vpop.xlane.xlu1 %277 }
  0xc8   :  { %v254_v50 = vpop.xlane.xlu0 %253  ;;  %v369_v6 = vrot.slane %v278_v47, %v783_v54 }
  0xc9   :  { %v330_v9 = vrot.slane %v254_v50, %v783_v54  ;;  %v196_v50 = vsel %vm144_vm2, %v195_v33, %v191_v34 }
  0xca   :  { %v370_v18 = vsel %vm179_vm7, %v369_v6, %v365_v14  ;;  %v201_v38 = vsel %vm151_vm3, %v200_v40, %v196_v50 }
  0xcb   :  { %v104_v61 = vpop.xlane.xlu1 %103  ;;  %v331_v20 = vsel %vm179_vm7, %v330_v9, %v326_v17 }
  0xcc   :  { %v80_v1 = vpop.xlane.xlu0 %79  ;;  %v205_v47 = vrot.slane %v104_v61, %v774_v45 }
  0xcd   :  { %v157_v28 = vrot.slane %v80_v1, %v774_v45  ;;  %v152_v45 = vsel %vm151_vm3, %v150_v43, %v145_v44 }
  0xce   :  { %v206_v51 = vsel %vm158_vm4, %v205_v47, %v201_v38 }
  0xcf   :  { %v281_v12 = vpop.xlane.xlu1 %280  ;;  %v159_v53 = vsel %vm158_vm4, %v157_v28, %v152_v45 }
  0xd0   :  { %v374_v15 = vrot.slane %v281_v12, %v794_v2  ;;  %v257_v16 = vpop.xlane.xlu0 %256 }
  0xd1   :  { %v335_v19 = vrot.slane %v257_v16, %v794_v2 }
  0xd2   :  { %v375_v21 = vsel %vm186_vm8, %v374_v15, %v370_v18 }
  0xd3   :  { %v336_v23 = vsel %vm186_vm8, %v335_v19, %v331_v20  ;;  %v107_v24 = vpop.xlane.xlu1 %106 }
  0xd4   :  { %v376_v27 = vsel %vm227_vm9, %v375_v21, %v336_v23  ;;  %v83_v30 = vpop.xlane.xlu0 %82  ;;  %v210_v48 = vrot.slane %v107_v24, %v776_v46 }
  0xd5   :  { %v378_v31 = vadd.f32 %v376_v27, %v233_v22  ;;  %v164_v25 = vrot.slane %v83_v30, %v776_v46 }
  0xd6   :  { %v211_v46 = vsel %vm165_vm5, %v210_v48, %v206_v51 }
  0xd7   :  { %v110_v32 = vpop.xlane.xlu1 %109  ;;  %379 = vst.msk [vmem:[#allocation3] sm:$0x3] %vm33_vm0, %v378_v31  ;;  %v166_v56 = vsel %vm165_vm5, %v164_v25, %v159_v53 }
  0xd8   :  { %v86_v35 = vpop.xlane.xlu0 %85  ;;  %v215_v39 = vrot.slane %v110_v32, %v779_v49 }
  0xd9   :  { %v171_v41 = vrot.slane %v86_v35, %v779_v49 }
  0xda   :  { %v216_v57 = vsel %vm172_vm6, %v215_v39, %v211_v46 }
  0xdb   :  { %v113_v29 = vpop.xlane.xlu1 %112  ;;  %v173_v59 = vsel %vm172_vm6, %v171_v41, %v166_v56 }
  0xdc   :  { %v89_v26 = vpop.xlane.xlu0 %88  ;;  %v220_v42 = vrot.slane %v113_v29, %v783_v54 }
  0xdd   :  { %v178_v52 = vrot.slane %v89_v26, %v783_v54 }
  0xde   :  { %v221_v60 = vsel %vm179_vm7, %v220_v42, %v216_v57  ;;  %v384_v4 = vld [vmem:[#allocation3] sm:$0x3] }
  0xdf   :  { %v116_v55 = vpop.xlane.xlu1 %115  ;;  %v180_v54 = vsel %vm179_vm7, %v178_v52, %v173_v59  ;;  %v385_v5 = vmul.f32 0.00390625, %v384_v4 }
  0xe0   :  { %v225_v58 = vrot.slane %v116_v55, %v794_v2  ;;  %v92_v49 = vpop.xlane.xlu0 %91 }
  0xe1   :  { %v185_v61 = vrot.slane %v92_v49, %v794_v2  ;;  %v387_v6 = vrot.slane %v385_v5, 6  ;;  %v474_v2 = vld [vmem:[%s872_s2] sm:$0xf]  ;;  %s664_s2 = scalar_lea.vmem %s571_s16, 32 }
  0xe2   :  { %v226_v62 = vsel %vm186_vm8, %v225_v58, %v221_v60  ;;  %614 = vmatpush3.msk.msra.mxu1 %vm479_vm12, %v474_v2  ;;  %p665_p8 = scmp.ne.s32.totalorder %s571_s16, %s664_s2  ;;  %p670_p10 = scmp.lt.s32.totalorder %s664_s2, %s664_s2 }
  0xe3   :  { %v187_v0 = vsel %vm186_vm8, %v185_v61, %v180_v54 }
  0xe4   :  { %v228_v1 = vsel %vm227_vm9, %v226_v62, %v187_v0  ;;  %p671_p11 = por %p670_p10, %p669_p9 }
  0xe5   :  { %v230_v3 = vmax.f32 %v68_v63, %v228_v1 }
  0xe6   :  { %p672_p12 = pnand %p671_p11, %p665_p8 }
  0xe7   :  { %232 = vst.msk [vmem:[#allocation2] sm:$0x3] %vm33_vm0, %v230_v3 }
  0xee   :  { %v383_v7 = vld [vmem:[#allocation2] sm:$0x3] }
  0xef   :  { %v390_v8 = vsel %vm389_vm10, %v383_v7, %v387_v6 }
  0xf0   :  { %611 = vmatmul.mubr.msk.f32.vlgmr.msra.gmra.mrb[0].mxu0 %vm399_vm11, %v390_v8 }
 0x1c3   :  { %v469_v9 = vpop.f32.mrb[0].mxu0 }
 0x1c4   :  { %v473_v10 = vmax.f32 %v469_v9, 0.0  ;;  %v612_v11 = vpop.f32.mrb[1].mxu0 }
 0x1c6   :  { %616 = vmatmul.mubr.msk.f32.vlgmr.msra.gmra.mrb[0].mxu1 %vm475_vm13, %v473_v10 }
 0x299   :  { %v549_v12 = vpop.f32.mrb[0].mxu1 }
 0x29a   :  { %v554_v13 = vrot.slane %v549_v12, 2  ;;  %v617_v14 = vpop.f32.mrb[1].mxu1 }
 0x29c   :  { %v556_v15 = vadd.f32 %v554_v13, %v549_v12 }
 0x29e   :  { %v582_v16 = vmul.f32 -1.442695, %v556_v15 }
 0x2a0   :  { %638 = vpow2.f32 %v582_v16 }
 0x2aa   :  { %v639_v17 = vpop.eup %638 }
 0x2ab   :  { %v560_v18 = vadd.f32 1.0, %v639_v17 }
 0x2ad   :  { %640 = vrcp.f32 %v560_v18 }
 0x2b7   :  { %v641_v19 = vpop.eup %640 }
 0x2b8   :  { %563 = vst.msk [vmem:[#allocation7] sm:$0x3] %vm33_vm0, %v641_v19 }
 0x2b9   :  { %675 = shalt.err (!%p672_p12)
}
 0x2ba   :  { %s676_s19 = scalar_lea.hbm %s873_s3, 32 }
 0x2bb   :  { %p677_p13 = scmp.ne.s32.totalorder %s873_s3, %s676_s19  ;;  %p680_p0 = scmp.lt.u32.totalorder %s676_s19, %s873_s3 }
 0x2bd   :  { %p682_p1 = pnand %p680_p0, %p677_p13 }
 0x2bf   :  { %685 = shalt.err (!%p682_p1)
}
 0x2c0   :  { %573 = dma.vmem_to_hbm [thread:$0]  %s571_s16, 32, %s873_s3, [#allocation6]  }
 0x2c1   :  { %688 = dma.done.wait [#allocation6], 32  }
 0x2c2   :  { %689 = vsyncadd [#allocation6], 4294967264 }
 0x2c3   :  { %577 = vsyncpa [#allocation5], 1 }
 0x2c4   :  { %578 = vsyncpa [#allocation6], 1 }

</bundles_post_ra>
